<compile_context>
chip_gen: v7x
topology: tpu7x:2x2x1
jax: 0.10.0
libtpu: 0.0.40
codegen_flags: <defaults>
</compile_context>

<pallas_src>
import functools

import jax
import jax.numpy as jnp
import numpy as np
from jax.experimental import pallas as pl
from jax.experimental.pallas import tpu as pltpu

SCALING = 0.01      # MultiTargetLoss(scaling=0.01)
SMOOTH_NR = 1e-5    # MONAI DiceLoss defaults
SMOOTH_DR = 1e-5

# accumulator rows: [asc_sq, desc_sq, base_inter, base_s, base_t, lim_inter, lim_s, lim_t]
_NUM_Q = 8


def _round_up(x, m):
    return (x + m - 1) // m * m


def _tensorcores_per_chip():
    # v7x has 2 TensorCores per chip; v5e / v6e have 1. Default safely to 1.
    try:
        kind = jax.devices()[0].device_kind.lower()
    except Exception:
        return 1
    return 2 if "v7" in kind else 1


def _make_kernel(hw, s_tile, steps_per_par, needs_mask):
    """Kernel over one (B, C, s_tile, 128) slab of the lane-dense spatial layout."""

    def kernel(pred_ref, tgt_ref, out_ref):
        i = pl.program_id(1)          # position along the reduction ("arbitrary") axis

        @pl.when(i == 0)
        def _init():
            out_ref[...] = jnp.zeros_like(out_ref)

        def plane(ref, c):
            # channel is an outer (non-minor) dim -> pure addressing, no relayout;
            # cast to f32 per tile so inputs stream in their native dtype.
            return ref[:, c, :, :].astype(jnp.float32)           # (B, s_tile, 128)

        if needs_mask:
            # Use the UNCLAMPED block index: phantom (clamped duplicate) steps, the
            # ragged last block and any zero-padded lanes all land at element
            # indices >= hw and are selected to zero (NaN/garbage safe).
            blk = pl.program_id(0) * steps_per_par + i
            start = blk * (s_tile * 128)
            sub = jax.lax.broadcasted_iota(jnp.int32, (s_tile, 128), 0)
            lane = jax.lax.broadcasted_iota(jnp.int32, (s_tile, 128), 1)
            valid = (start + sub * 128 + lane) < hw              # (s_tile, 128), broadcasts over B
            msk = lambda x: jnp.where(valid, x, 0.0)
        else:
            msk = lambda x: x

        base_mask = plane(tgt_ref, 2)                            # baseline mask, also MSE gate
        d_asc = msk(plane(pred_ref, 0) * base_mask - plane(tgt_ref, 0))
        d_desc = msk(plane(pred_ref, 1) * base_mask - plane(tgt_ref, 1))

        def dice_terms(logit_bg, logit_fg, tgt_plane):
            # DiceLoss(include_background=False, to_onehot_y=True, softmax=True) on a
            # 2-channel prediction: only the foreground channel contributes, and the
            # 2-class softmax fg prob == sigmoid(fg - bg) (EUP path, no VALU divide).
            s_fg = msk(jax.nn.sigmoid(logit_fg - logit_bg))
            # to_onehot_y truncates the target to int before the class compare (MONAI).
            t_fg = msk((tgt_plane.astype(jnp.int32) == 1).astype(jnp.float32))
            return s_fg * t_fg, s_fg, t_fg                       # intersection inherits the mask

        b_i, b_s, b_t = dice_terms(plane(pred_ref, 2), plane(pred_ref, 3), base_mask)
        l_i, l_s, l_t = dice_terms(plane(pred_ref, 4), plane(pred_ref, 5), plane(tgt_ref, 3))

        partials = (d_asc * d_asc, d_desc * d_desc, b_i, b_s, b_t, l_i, l_s, l_t)
        for q, val in enumerate(partials):
            # fold only the sublane axis; lanes stay dense -> full-lane-width RMW stores
            out_ref[0, q] += jnp.sum(val, axis=1)                # (B, 128)

    return kernel


@functools.partial(jax.jit, static_argnames=("tile_hw", "num_parallel"))
def multi_target_loss(pred, target, *, tile_hw=None, num_parallel=None):
    """pred: (B, 6, H, W), target: (B, 4, H, W) -> (loss, asc, desc, baseline, limits)."""
    B, Cp, H, W = pred.shape
    Bt, Ct, Ht, Wt = target.shape
    assert Cp == 6 and Ct == 4 and (B, H, W) == (Bt, Ht, Wt)
    HW = H * W
    HWp = _round_up(HW, 128)

    pred3 = pred.reshape(B, Cp, HW)                # free reshapes, no dtype upcast here
    tgt3 = target.reshape(B, Ct, HW)
    if HWp != HW:
        # rare case: spatial size not a multiple of 128 -> one zero-pad copy
        pred3 = jnp.pad(pred3, ((0, 0), (0, 0), (0, HWp - HW)))
        tgt3 = jnp.pad(tgt3, ((0, 0), (0, 0), (0, HWp - HW)))
    S = HWp // 128
    pred4 = pred3.reshape(B, Cp, S, 128)           # lane-dense layout, channel = outer dim
    tgt4 = tgt3.reshape(B, Ct, S, 128)

    ip = jnp.dtype(pred.dtype).itemsize
    it = jnp.dtype(target.dtype).itemsize
    bytes_per_sublane = 128 * B * (Cp * ip + Ct * it)

    # ~24 MiB of double-buffered input blocks keeps per-step DMA well above the
    # ~0.35 us fixed grid-step overhead (even at v7x 3.2 TB/s) while leaving
    # headroom inside v7x's 64 MiB VMEM.
    budget = 24 << 20
    cap = max(8, (budget // (2 * bytes_per_sublane)) // 8 * 8)   # sublanes per tile
    if tile_hw is None:
        want = cap
    else:
        want = max(8, _round_up(max(int(tile_hw), 128) // 128, 8))
    if want >= S:
        s_tile = S                                  # single full-extent block (no constraint)
    else:
        s_tile = min(want, cap) // 8 * 8
        # prefer a nearby divisor of S so the steady-state loop needs no masking
        for d in range(s_tile, max(8, s_tile // 2) - 1, -8):
            if S % d == 0:
                s_tile = d
                break

    nblocks = -(-S // s_tile)
    if num_parallel is None:
        npar = _tensorcores_per_chip() if nblocks >= 2 else 1
    else:
        npar = int(num_parallel)
    npar = max(1, min(npar, nblocks))
    steps = -(-nblocks // npar)
    needs_mask = (npar * steps * s_tile * 128) != HW

    def in_map(p, i):
        # clamp so phantom grid steps re-read the last real block (masked in-kernel)
        return (0, 0, jnp.minimum(p * steps + i, nblocks - 1), 0)

    in_block_bytes = B * s_tile * 128 * (Cp * ip + Ct * it)
    out_block_bytes = _NUM_Q * B * 128 * 4
    vmem_limit = int(min(48 << 20,
                         max(4 << 20, 2 * (in_block_bytes + out_block_bytes) + (8 << 20))))

    raw = pl.pallas_call(
        _make_kernel(HW, s_tile, steps, needs_mask),
        out_shape=jax.ShapeDtypeStruct((npar, _NUM_Q, B, 128), jnp.float32),
        grid=(npar, steps),
        in_specs=[pl.BlockSpec((B, Cp, s_tile, 128), in_map),
                  pl.BlockSpec((B, Ct, s_tile, 128), in_map)],
        out_specs=pl.BlockSpec((1, _NUM_Q, B, 128), lambda p, i: (p, 0, 0, 0)),
        compiler_params=pltpu.CompilerParams(
            dimension_semantics=("parallel", "arbitrary"),
            vmem_limit_bytes=vmem_limit),
    )(pred4, tgt4)

    # ---- tiny finalize in plain JAX: fold cores & lanes, normalize, combine ----
    s = jnp.sum(raw, axis=(0, 3))                    # (8, B) raw sums
    n = jnp.float32(B * HW)
    asc = jnp.sum(s[0]) / n
    desc = jnp.sum(s[1]) / n
    base = jnp.mean(1.0 - (2.0 * s[2] + SMOOTH_NR) / (s[3] + s[4] + SMOOTH_DR))
    lim = jnp.mean(1.0 - (2.0 * s[5] + SMOOTH_NR) / (s[6] + s[7] + SMOOTH_DR))
    total = SCALING * (asc + desc) + base + lim
    return total, asc, desc, base, lim


# ---------------- pure-JAX reference (for sanity checking) ----------------
def _reference(pred, target):
    pred = pred.astype(jnp.float32)
    target = target.astype(jnp.float32)
    asc = jnp.mean((pred[:, 0] * target[:, 2] - target[:, 0]) ** 2)
    desc = jnp.mean((pred[:, 1] * target[:, 2] - target[:, 1]) ** 2)

    def dice(p2ch, tplane):
        s = jax.nn.softmax(p2ch, axis=1)[:, 1]
        t = (tplane.astype(jnp.int32) == 1).astype(jnp.float32)
        inter = jnp.sum(s * t, axis=(1, 2))
        denom = jnp.sum(t, axis=(1, 2)) + jnp.sum(s, axis=(1, 2))
        return jnp.mean(1.0 - (2.0 * inter + SMOOTH_NR) / (denom + SMOOTH_DR))

    base = dice(pred[:, 2:4], target[:, 2])
    lim = dice(pred[:, 4:6], target[:, 3])
    total = SCALING * (asc + desc) + base + lim
    return total, asc, desc, base, lim


if __name__ == "__main__":
    def make_inputs(key, B, H, W, dtype):
        kp, k0, k1, k2, k3 = jax.random.split(key, 5)
        pred = jax.random.normal(kp, (B, 6, H, W), dtype=jnp.float32).astype(dtype)
        t0 = jax.random.normal(k0, (B, H, W), dtype=jnp.float32)          # ascender heights
        t1 = jax.random.normal(k1, (B, H, W), dtype=jnp.float32)          # descender heights
        t2 = jax.random.bernoulli(k2, 0.3, (B, H, W)).astype(jnp.float32)  # baseline mask
        t3 = jax.random.bernoulli(k3, 0.3, (B, H, W)).astype(jnp.float32)  # limits mask
        target = jnp.stack([t0, t1, t2, t3], axis=1).astype(dtype)
        return pred, target

    def check(pred, target, **kw):
        out = jax.block_until_ready(multi_target_loss(pred, target, **kw))
        ref = _reference(pred, target)
        for got, want in zip(out, ref):
            np.testing.assert_allclose(np.asarray(got), np.asarray(want),
                                       rtol=1e-4, atol=1e-5)

    key = jax.random.PRNGKey(0)
    ka, kb, kc, kd = jax.random.split(key, 4)

    # 1) default auto-tiling: single full-extent block, no masking
    p, t = make_inputs(ka, 2, 16, 16, jnp.float32)
    check(p, t)

    # 2) multi-block reduction + 2-way parallel axis + clamped phantom step + ragged tail
    p, t = make_inputs(kb, 3, 48, 48, jnp.float32)
    check(p, t, tile_hw=1024, num_parallel=2)

    # 3) native bf16 inputs (kernel casts to f32 per tile -> half the HBM traffic)
    p, t = make_inputs(kc, 2, 32, 32, jnp.bfloat16)
    check(p, t)

    # 4) spatial size not a multiple of 128 (wrapper zero-pad + in-kernel mask)
    p, t = make_inputs(kd, 2, 10, 10, jnp.float32)
    check(p, t)

    print("KERNEL_OK")
</pallas_src>

<mosaic_0001>
module attributes {stable_mosaic.version = 11 : i64} {
  func.func @kernel(%arg0: i32, %arg1: i32, %arg2: memref<2x6x2x128xf32, #tpu.memory_space<vmem>>, %arg3: memref<2x4x2x128xf32, #tpu.memory_space<vmem>>, %arg4: memref<1x8x2x128xf32, #tpu.memory_space<vmem>>) attributes {dimension_semantics = [#tpu.dimension_semantics<parallel>, #tpu.dimension_semantics<arbitrary>], iteration_bounds = array<i64: 1, 1>, scalar_prefetch = 0 : i64, scratch_operands = 0 : i64, tpu.core_type = #tpu.core_type<tc>, window_params = [{transform_indices = @transform_0, window_bounds = array<i64: 2, 6, 2, 128>}, {transform_indices = @transform_1, window_bounds = array<i64: 2, 4, 2, 128>}, {transform_indices = @transform_2, window_bounds = array<i64: 1, 8, 2, 128>}]} {
    %c0_i32 = arith.constant 0 : i32
    %0 = arith.cmpi eq, %arg1, %c0_i32 : i32
    %1 = arith.extui %0 : i1 to i32
    %c0_i32_0 = arith.constant 0 : i32
    %2 = arith.cmpi ne, %1, %c0_i32_0 : i32
    scf.if %2 {
      %cst_107 = arith.constant 0.000000e+00 : f32
      %109 = vector.broadcast %cst_107 : f32 to vector<1x8x2x128xf32>
      %c0_108 = arith.constant 0 : index
      %c0_109 = arith.constant 0 : index
      %c0_110 = arith.constant 0 : index
      %c0_111 = arith.constant 0 : index
      %110 = vector.load %arg4[%c0_108, %c0_109, %c0_110, %c0_111] : memref<1x8x2x128xf32, #tpu.memory_space<vmem>>, vector<1x8x2x128xf32>
      tpu.vector_store %arg4[%c0_108, %c0_109, %c0_110, %c0_111], %109 {strides = array<i32>} : memref<1x8x2x128xf32, #tpu.memory_space<vmem>>, vector<1x8x2x128xf32>,
    } else {
    }
    %c0 = arith.constant 0 : index
    %c2 = arith.constant 2 : index
    %c0_1 = arith.constant 0 : index
    %c0_2 = arith.constant 0 : index
    %3 = vector.load %arg3[%c0, %c2, %c0_1, %c0_2] : memref<2x4x2x128xf32, #tpu.memory_space<vmem>>, vector<2x1x2x128xf32>
    %4 = vector.shape_cast %3 : vector<2x1x2x128xf32> to vector<2x2x128xf32>
    %c0_3 = arith.constant 0 : index
    %c0_4 = arith.constant 0 : index
    %c0_5 = arith.constant 0 : index
    %c0_6 = arith.constant 0 : index
    %5 = vector.load %arg2[%c0_3, %c0_4, %c0_5, %c0_6] : memref<2x6x2x128xf32, #tpu.memory_space<vmem>>, vector<2x1x2x128xf32>
    %6 = vector.shape_cast %5 : vector<2x1x2x128xf32> to vector<2x2x128xf32>
    %7 = arith.mulf %6, %4 : vector<2x2x128xf32>
    %c0_7 = arith.constant 0 : index
    %c0_8 = arith.constant 0 : index
    %c0_9 = arith.constant 0 : index
    %c0_10 = arith.constant 0 : index
    %8 = vector.load %arg3[%c0_7, %c0_8, %c0_9, %c0_10] : memref<2x4x2x128xf32, #tpu.memory_space<vmem>>, vector<2x1x2x128xf32>
    %9 = vector.shape_cast %8 : vector<2x1x2x128xf32> to vector<2x2x128xf32>
    %10 = arith.subf %7, %9 : vector<2x2x128xf32>
    %c0_11 = arith.constant 0 : index
    %c1 = arith.constant 1 : index
    %c0_12 = arith.constant 0 : index
    %c0_13 = arith.constant 0 : index
    %11 = vector.load %arg2[%c0_11, %c1, %c0_12, %c0_13] : memref<2x6x2x128xf32, #tpu.memory_space<vmem>>, vector<2x1x2x128xf32>
    %12 = vector.shape_cast %11 : vector<2x1x2x128xf32> to vector<2x2x128xf32>
    %13 = arith.mulf %12, %4 : vector<2x2x128xf32>
    %c0_14 = arith.constant 0 : index
    %c1_15 = arith.constant 1 : index
    %c0_16 = arith.constant 0 : index
    %c0_17 = arith.constant 0 : index
    %14 = vector.load %arg3[%c0_14, %c1_15, %c0_16, %c0_17] : memref<2x4x2x128xf32, #tpu.memory_space<vmem>>, vector<2x1x2x128xf32>
    %15 = vector.shape_cast %14 : vector<2x1x2x128xf32> to vector<2x2x128xf32>
    %16 = arith.subf %13, %15 : vector<2x2x128xf32>
    %c0_18 = arith.constant 0 : index
    %c2_19 = arith.constant 2 : index
    %c0_20 = arith.constant 0 : index
    %c0_21 = arith.constant 0 : index
    %17 = vector.load %arg2[%c0_18, %c2_19, %c0_20, %c0_21] : memref<2x6x2x128xf32, #tpu.memory_space<vmem>>, vector<2x1x2x128xf32>
    %18 = vector.shape_cast %17 : vector<2x1x2x128xf32> to vector<2x2x128xf32>
    %c0_22 = arith.constant 0 : index
    %c3 = arith.constant 3 : index
    %c0_23 = arith.constant 0 : index
    %c0_24 = arith.constant 0 : index
    %19 = vector.load %arg2[%c0_22, %c3, %c0_23, %c0_24] : memref<2x6x2x128xf32, #tpu.memory_space<vmem>>, vector<2x1x2x128xf32>
    %20 = vector.shape_cast %19 : vector<2x1x2x128xf32> to vector<2x2x128xf32>
    %21 = arith.subf %20, %18 : vector<2x2x128xf32>
    %22 = arith.negf %21 : vector<2x2x128xf32>
    %23 = math.exp %22 : vector<2x2x128xf32>
    %cst = arith.constant 1.000000e+00 : f32
    %24 = vector.broadcast %cst : f32 to vector<2x2x128xf32>
    %25 = arith.addf %24, %23 : vector<2x2x128xf32>
    %26 = arith.divf %24, %25 : vector<2x2x128xf32>
    %27 = arith.fptosi %4 : vector<2x2x128xf32> to vector<2x2x128xi32>
    %c1_i32 = arith.constant 1 : i32
    %28 = vector.broadcast %c1_i32 : i32 to vector<2x2x128xi32>
    %29 = arith.cmpi eq, %27, %28 : vector<2x2x128xi32>
    %30 = arith.extui %29 : vector<2x2x128xi1> to vector<2x2x128xi32>
    %31 = arith.sitofp %30 : vector<2x2x128xi32> to vector<2x2x128xf32>
    %32 = arith.mulf %26, %31 : vector<2x2x128xf32>
    %c0_25 = arith.constant 0 : index
    %c4 = arith.constant 4 : index
    %c0_26 = arith.constant 0 : index
    %c0_27 = arith.constant 0 : index
    %33 = vector.load %arg2[%c0_25, %c4, %c0_26, %c0_27] : memref<2x6x2x128xf32, #tpu.memory_space<vmem>>, vector<2x1x2x128xf32>
    %34 = vector.shape_cast %33 : vector<2x1x2x128xf32> to vector<2x2x128xf32>
    %c0_28 = arith.constant 0 : index
    %c5 = arith.constant 5 : index
    %c0_29 = arith.constant 0 : index
    %c0_30 = arith.constant 0 : index
    %35 = vector.load %arg2[%c0_28, %c5, %c0_29, %c0_30] : memref<2x6x2x128xf32, #tpu.memory_space<vmem>>, vector<2x1x2x128xf32>
    %36 = vector.shape_cast %35 : vector<2x1x2x128xf32> to vector<2x2x128xf32>
    %c0_31 = arith.constant 0 : index
    %c3_32 = arith.constant 3 : index
    %c0_33 = arith.constant 0 : index
    %c0_34 = arith.constant 0 : index
    %37 = vector.load %arg3[%c0_31, %c3_32, %c0_33, %c0_34] : memref<2x4x2x128xf32, #tpu.memory_space<vmem>>, vector<2x1x2x128xf32>
    %38 = vector.shape_cast %37 : vector<2x1x2x128xf32> to vector<2x2x128xf32>
    %39 = arith.subf %36, %34 : vector<2x2x128xf32>
    %40 = arith.negf %39 : vector<2x2x128xf32>
    %41 = math.exp %40 : vector<2x2x128xf32>
    %cst_35 = arith.constant 1.000000e+00 : f32
    %42 = vector.broadcast %cst_35 : f32 to vector<2x2x128xf32>
    %43 = arith.addf %42, %41 : vector<2x2x128xf32>
    %44 = arith.divf %42, %43 : vector<2x2x128xf32>
    %45 = arith.fptosi %38 : vector<2x2x128xf32> to vector<2x2x128xi32>
    %c1_i32_36 = arith.constant 1 : i32
    %46 = vector.broadcast %c1_i32_36 : i32 to vector<2x2x128xi32>
    %47 = arith.cmpi eq, %45, %46 : vector<2x2x128xi32>
    %48 = arith.extui %47 : vector<2x2x128xi1> to vector<2x2x128xi32>
    %49 = arith.sitofp %48 : vector<2x2x128xi32> to vector<2x2x128xf32>
    %50 = arith.mulf %44, %49 : vector<2x2x128xf32>
    %51 = arith.mulf %10, %10 : vector<2x2x128xf32>
    %52 = arith.mulf %16, %16 : vector<2x2x128xf32>
    %c0_37 = arith.constant 0 : index
    %c0_38 = arith.constant 0 : index
    %c0_39 = arith.constant 0 : index
    %c0_40 = arith.constant 0 : index
    %53 = vector.load %arg4[%c0_37, %c0_38, %c0_39, %c0_40] : memref<1x8x2x128xf32, #tpu.memory_space<vmem>>, vector<1x1x2x128xf32>
    %54 = vector.shape_cast %53 : vector<1x1x2x128xf32> to vector<2x128xf32>
    %cst_41 = arith.constant dense<0.000000e+00> : vector<2x128xf32>
    %55 = vector.multi_reduction <add>, %51, %cst_41 [1] : vector<2x2x128xf32> to vector<2x128xf32>
    %56 = arith.addf %54, %55 : vector<2x128xf32>
    %c0_42 = arith.constant 0 : index
    %c0_43 = arith.constant 0 : index
    %c0_44 = arith.constant 0 : index
    %c0_45 = arith.constant 0 : index
    %57 = vector.load %arg4[%c0_42, %c0_43, %c0_44, %c0_45] : memref<1x8x2x128xf32, #tpu.memory_space<vmem>>, vector<1x1x2x128xf32>
    %58 = vector.shape_cast %57 : vector<1x1x2x128xf32> to vector<2x128xf32>
    %59 = vector.shape_cast %56 : vector<2x128xf32> to vector<1x1x2x128xf32>
    tpu.vector_store %arg4[%c0_42, %c0_43, %c0_44, %c0_45], %59 {strides = array<i32>} : memref<1x8x2x128xf32, #tpu.memory_space<vmem>>, vector<1x1x2x128xf32>,
    %c0_46 = arith.constant 0 : index
    %c1_47 = arith.constant 1 : index
    %c0_48 = arith.constant 0 : index
    %c0_49 = arith.constant 0 : index
    %60 = vector.load %arg4[%c0_46, %c1_47, %c0_48, %c0_49] : memref<1x8x2x128xf32, #tpu.memory_space<vmem>>, vector<1x1x2x128xf32>
    %61 = vector.shape_cast %60 : vector<1x1x2x128xf32> to vector<2x128xf32>
    %cst_50 = arith.constant dense<0.000000e+00> : vector<2x128xf32>
    %62 = vector.multi_reduction <add>, %52, %cst_50 [1] : vector<2x2x128xf32> to vector<2x128xf32>
    %63 = arith.addf %61, %62 : vector<2x128xf32>
    %c0_51 = arith.constant 0 : index
    %c1_52 = arith.constant 1 : index
    %c0_53 = arith.constant 0 : index
    %c0_54 = arith.constant 0 : index
    %64 = vector.load %arg4[%c0_51, %c1_52, %c0_53, %c0_54] : memref<1x8x2x128xf32, #tpu.memory_space<vmem>>, vector<1x1x2x128xf32>
    %65 = vector.shape_cast %64 : vector<1x1x2x128xf32> to vector<2x128xf32>
    %66 = vector.shape_cast %63 : vector<2x128xf32> to vector<1x1x2x128xf32>
    tpu.vector_store %arg4[%c0_51, %c1_52, %c0_53, %c0_54], %66 {strides = array<i32>} : memref<1x8x2x128xf32, #tpu.memory_space<vmem>>, vector<1x1x2x128xf32>,
    %c0_55 = arith.constant 0 : index
    %c2_56 = arith.constant 2 : index
    %c0_57 = arith.constant 0 : index
    %c0_58 = arith.constant 0 : index
    %67 = vector.load %arg4[%c0_55, %c2_56, %c0_57, %c0_58] : memref<1x8x2x128xf32, #tpu.memory_space<vmem>>, vector<1x1x2x128xf32>
    %68 = vector.shape_cast %67 : vector<1x1x2x128xf32> to vector<2x128xf32>
    %cst_59 = arith.constant dense<0.000000e+00> : vector<2x128xf32>
    %69 = vector.multi_reduction <add>, %32, %cst_59 [1] : vector<2x2x128xf32> to vector<2x128xf32>
    %70 = arith.addf %68, %69 : vector<2x128xf32>
    %c0_60 = arith.constant 0 : index
    %c2_61 = arith.constant 2 : index
    %c0_62 = arith.constant 0 : index
    %c0_63 = arith.constant 0 : index
    %71 = vector.load %arg4[%c0_60, %c2_61, %c0_62, %c0_63] : memref<1x8x2x128xf32, #tpu.memory_space<vmem>>, vector<1x1x2x128xf32>
    %72 = vector.shape_cast %71 : vector<1x1x2x128xf32> to vector<2x128xf32>
    %73 = vector.shape_cast %70 : vector<2x128xf32> to vector<1x1x2x128xf32>
    tpu.vector_store %arg4[%c0_60, %c2_61, %c0_62, %c0_63], %73 {strides = array<i32>} : memref<1x8x2x128xf32, #tpu.memory_space<vmem>>, vector<1x1x2x128xf32>,
    %c0_64 = arith.constant 0 : index
    %c3_65 = arith.constant 3 : index
    %c0_66 = arith.constant 0 : index
    %c0_67 = arith.constant 0 : index
    %74 = vector.load %arg4[%c0_64, %c3_65, %c0_66, %c0_67] : memref<1x8x2x128xf32, #tpu.memory_space<vmem>>, vector<1x1x2x128xf32>
    %75 = vector.shape_cast %74 : vector<1x1x2x128xf32> to vector<2x128xf32>
    %cst_68 = arith.constant dense<0.000000e+00> : vector<2x128xf32>
    %76 = vector.multi_reduction <add>, %26, %cst_68 [1] : vector<2x2x128xf32> to vector<2x128xf32>
    %77 = arith.addf %75, %76 : vector<2x128xf32>
    %c0_69 = arith.constant 0 : index
    %c3_70 = arith.constant 3 : index
    %c0_71 = arith.constant 0 : index
    %c0_72 = arith.constant 0 : index
    %78 = vector.load %arg4[%c0_69, %c3_70, %c0_71, %c0_72] : memref<1x8x2x128xf32, #tpu.memory_space<vmem>>, vector<1x1x2x128xf32>
    %79 = vector.shape_cast %78 : vector<1x1x2x128xf32> to vector<2x128xf32>
    %80 = vector.shape_cast %77 : vector<2x128xf32> to vector<1x1x2x128xf32>
    tpu.vector_store %arg4[%c0_69, %c3_70, %c0_71, %c0_72], %80 {strides = array<i32>} : memref<1x8x2x128xf32, #tpu.memory_space<vmem>>, vector<1x1x2x128xf32>,
    %c0_73 = arith.constant 0 : index
    %c4_74 = arith.constant 4 : index
    %c0_75 = arith.constant 0 : index
    %c0_76 = arith.constant 0 : index
    %81 = vector.load %arg4[%c0_73, %c4_74, %c0_75, %c0_76] : memref<1x8x2x128xf32, #tpu.memory_space<vmem>>, vector<1x1x2x128xf32>
    %82 = vector.shape_cast %81 : vector<1x1x2x128xf32> to vector<2x128xf32>
    %cst_77 = arith.constant dense<0.000000e+00> : vector<2x128xf32>
    %83 = vector.multi_reduction <add>, %31, %cst_77 [1] : vector<2x2x128xf32> to vector<2x128xf32>
    %84 = arith.addf %82, %83 : vector<2x128xf32>
    %c0_78 = arith.constant 0 : index
    %c4_79 = arith.constant 4 : index
    %c0_80 = arith.constant 0 : index
    %c0_81 = arith.constant 0 : index
    %85 = vector.load %arg4[%c0_78, %c4_79, %c0_80, %c0_81] : memref<1x8x2x128xf32, #tpu.memory_space<vmem>>, vector<1x1x2x128xf32>
    %86 = vector.shape_cast %85 : vector<1x1x2x128xf32> to vector<2x128xf32>
    %87 = vector.shape_cast %84 : vector<2x128xf32> to vector<1x1x2x128xf32>
    tpu.vector_store %arg4[%c0_78, %c4_79, %c0_80, %c0_81], %87 {strides = array<i32>} : memref<1x8x2x128xf32, #tpu.memory_space<vmem>>, vector<1x1x2x128xf32>,
    %c0_82 = arith.constant 0 : index
    %c5_83 = arith.constant 5 : index
    %c0_84 = arith.constant 0 : index
    %c0_85 = arith.constant 0 : index
    %88 = vector.load %arg4[%c0_82, %c5_83, %c0_84, %c0_85] : memref<1x8x2x128xf32, #tpu.memory_space<vmem>>, vector<1x1x2x128xf32>
    %89 = vector.shape_cast %88 : vector<1x1x2x128xf32> to vector<2x128xf32>
    %cst_86 = arith.constant dense<0.000000e+00> : vector<2x128xf32>
    %90 = vector.multi_reduction <add>, %50, %cst_86 [1] : vector<2x2x128xf32> to vector<2x128xf32>
    %91 = arith.addf %89, %90 : vector<2x128xf32>
    %c0_87 = arith.constant 0 : index
    %c5_88 = arith.constant 5 : index
    %c0_89 = arith.constant 0 : index
    %c0_90 = arith.constant 0 : index
    %92 = vector.load %arg4[%c0_87, %c5_88, %c0_89, %c0_90] : memref<1x8x2x128xf32, #tpu.memory_space<vmem>>, vector<1x1x2x128xf32>
    %93 = vector.shape_cast %92 : vector<1x1x2x128xf32> to vector<2x128xf32>
    %94 = vector.shape_cast %91 : vector<2x128xf32> to vector<1x1x2x128xf32>
    tpu.vector_store %arg4[%c0_87, %c5_88, %c0_89, %c0_90], %94 {strides = array<i32>} : memref<1x8x2x128xf32, #tpu.memory_space<vmem>>, vector<1x1x2x128xf32>,
    %c0_91 = arith.constant 0 : index
    %c6 = arith.constant 6 : index
    %c0_92 = arith.constant 0 : index
    %c0_93 = arith.constant 0 : index
    %95 = vector.load %arg4[%c0_91, %c6, %c0_92, %c0_93] : memref<1x8x2x128xf32, #tpu.memory_space<vmem>>, vector<1x1x2x128xf32>
    %96 = vector.shape_cast %95 : vector<1x1x2x128xf32> to vector<2x128xf32>
    %cst_94 = arith.constant dense<0.000000e+00> : vector<2x128xf32>
    %97 = vector.multi_reduction <add>, %44, %cst_94 [1] : vector<2x2x128xf32> to vector<2x128xf32>
    %98 = arith.addf %96, %97 : vector<2x128xf32>
    %c0_95 = arith.constant 0 : index
    %c6_96 = arith.constant 6 : index
    %c0_97 = arith.constant 0 : index
    %c0_98 = arith.constant 0 : index
    %99 = vector.load %arg4[%c0_95, %c6_96, %c0_97, %c0_98] : memref<1x8x2x128xf32, #tpu.memory_space<vmem>>, vector<1x1x2x128xf32>
    %100 = vector.shape_cast %99 : vector<1x1x2x128xf32> to vector<2x128xf32>
    %101 = vector.shape_cast %98 : vector<2x128xf32> to vector<1x1x2x128xf32>
    tpu.vector_store %arg4[%c0_95, %c6_96, %c0_97, %c0_98], %101 {strides = array<i32>} : memref<1x8x2x128xf32, #tpu.memory_space<vmem>>, vector<1x1x2x128xf32>,
    %c0_99 = arith.constant 0 : index
    %c7 = arith.constant 7 : index
    %c0_100 = arith.constant 0 : index
    %c0_101 = arith.constant 0 : index
    %102 = vector.load %arg4[%c0_99, %c7, %c0_100, %c0_101] : memref<1x8x2x128xf32, #tpu.memory_space<vmem>>, vector<1x1x2x128xf32>
    %103 = vector.shape_cast %102 : vector<1x1x2x128xf32> to vector<2x128xf32>
    %cst_102 = arith.constant dense<0.000000e+00> : vector<2x128xf32>
    %104 = vector.multi_reduction <add>, %49, %cst_102 [1] : vector<2x2x128xf32> to vector<2x128xf32>
    %105 = arith.addf %103, %104 : vector<2x128xf32>
    %c0_103 = arith.constant 0 : index
    %c7_104 = arith.constant 7 : index
    %c0_105 = arith.constant 0 : index
    %c0_106 = arith.constant 0 : index
    %106 = vector.load %arg4[%c0_103, %c7_104, %c0_105, %c0_106] : memref<1x8x2x128xf32, #tpu.memory_space<vmem>>, vector<1x1x2x128xf32>
    %107 = vector.shape_cast %106 : vector<1x1x2x128xf32> to vector<2x128xf32>
    %108 = vector.shape_cast %105 : vector<2x128xf32> to vector<1x1x2x128xf32>
    tpu.vector_store %arg4[%c0_103, %c7_104, %c0_105, %c0_106], %108 {strides = array<i32>} : memref<1x8x2x128xf32, #tpu.memory_space<vmem>>, vector<1x1x2x128xf32>,
    return
  }
  func.func @transform_0(%arg0: i32, %arg1: i32) -> (i32, i32, i32, i32) {
    %c1_i32 = arith.constant 1 : i32
    %0 = arith.muli %arg0, %c1_i32 : i32
    %1 = arith.addi %0, %arg1 : i32
    %c0_i32 = arith.constant 0 : i32
    %2 = arith.minsi %1, %c0_i32 : i32
    %c0_i32_0 = arith.constant 0 : i32
    %c0_i32_1 = arith.constant 0 : i32
    %c0_i32_2 = arith.constant 0 : i32
    %c0_i32_3 = arith.constant 0 : i32
    return %c0_i32_0, %c0_i32_1, %2, %c0_i32_2 : i32, i32, i32, i32
  }
  func.func @transform_1(%arg0: i32, %arg1: i32) -> (i32, i32, i32, i32) {
    %c1_i32 = arith.constant 1 : i32
    %0 = arith.muli %arg0, %c1_i32 : i32
    %1 = arith.addi %0, %arg1 : i32
    %c0_i32 = arith.constant 0 : i32
    %2 = arith.minsi %1, %c0_i32 : i32
    %c0_i32_0 = arith.constant 0 : i32
    %c0_i32_1 = arith.constant 0 : i32
    %c0_i32_2 = arith.constant 0 : i32
    %c0_i32_3 = arith.constant 0 : i32
    return %c0_i32_0, %c0_i32_1, %2, %c0_i32_2 : i32, i32, i32, i32
  }
  func.func @transform_2(%arg0: i32, %arg1: i32) -> (i32, i32, i32, i32) {
    %c0_i32 = arith.constant 0 : i32
    %c0_i32_0 = arith.constant 0 : i32
    %c0_i32_1 = arith.constant 0 : i32
    %c0_i32_2 = arith.constant 0 : i32
    return %arg0, %c0_i32, %c0_i32_0, %c0_i32_1 : i32, i32, i32, i32
  }
}

</mosaic_0001>

<bundles_post_ra>
// kernel: multi_target_loss.1
= control target key start
LH: loop header
LB: loop body
LE: loop exit
PB: predicated region body
PF: predicated region fallthrough
CT: control target
= control target key end

     0   :  { %v421_v0 = vmov 0.0   ;;  %vm166_vm0 = vcmask 1041408   ;;  %vm183_vm3 = vcmask 1041409   ;;  %s613_s2 = inlined_call_operand.vmem [shape: f32[1,8,2,128], index: 2, kind: output, shape index: {}]   ;;  %s614_s0 = inlined_call_operand.vmem [shape: f32[2,6,2,128], index: 0, kind: input, shape index: {}]   ;;  %s615_s1 = inlined_call_operand.vmem [shape: f32[2,4,2,128], index: 1, kind: input, shape index: {}]  }
   0x1   :  { %69 = vst [vmem:[%s613_s2] sm:$0x3] %v421_v0  ;;  %70 = vst [vmem:[%s613_s2 + $0x2] sm:$0x3] %v421_v0  ;;  %v358_v1 = vld [vmem:[%s615_s1 + $0x4] sm:$0x3] }
   0x2   :  { %71 = vst [vmem:[%s613_s2 + $0x4] sm:$0x3] %v421_v0  ;;  %72 = vst [vmem:[%s613_s2 + $0x6] sm:$0x3] %v421_v0  ;;  %v359_v2 = vld [vmem:[%s615_s1 + $0xc] sm:$0x3]  ;;  %v396_v8 = vtrunc.f32 %v358_v1 }
   0x3   :  { %73 = vst [vmem:[%s613_s2 + $0x8] sm:$0x3] %v421_v0  ;;  %74 = vst [vmem:[%s613_s2 + $0xa] sm:$0x3] %v421_v0  ;;  %v80_v3 = vld [vmem:[%s614_s0] sm:$0x3]  ;;  %v398_v9 = vtrunc.f32 %v359_v2 }
   0x4   :  { %75 = vst [vmem:[%s613_s2 + $0xc] sm:$0x3] %v421_v0  ;;  %76 = vst [vmem:[%s613_s2 + $0xe] sm:$0x3] %v421_v0  ;;  %v81_v4 = vld [vmem:[%s614_s0 + $0xc] sm:$0x3]  ;;  %v82_v5 = vmul.f32 %v358_v1, %v80_v3  ;;  %v397_v20 = vcvt.f32.s32 %v396_v8 }
   0x5   :  { %v84_v6 = vld [vmem:[%s615_s1] sm:$0x3]  ;;  %v85_v7 = vld [vmem:[%s615_s1 + $0x8] sm:$0x3]  ;;  %v83_v10 = vmul.f32 %v359_v2, %v81_v4  ;;  %v360_v11 = vld [vmem:[%s614_s0 + $0x2] sm:$0x3]  ;;  %v399_v24 = vcvt.f32.s32 %v398_v9 }
   0x6   :  { %v361_v12 = vld [vmem:[%s614_s0 + $0xe] sm:$0x3]  ;;  %v362_v13 = vld [vmem:[%s615_s1 + $0x2] sm:$0x3]  ;;  %v86_v14 = vsub.f32 %v82_v5, %v84_v6  ;;  %v91_v15 = vmul.f32 %v360_v11, %v358_v1  ;;  %v363_v17 = vld [vmem:[%s615_s1 + $0xa] sm:$0x3] }
   0x7   :  { %v92_v16 = vmul.f32 %v361_v12, %v359_v2  ;;  %v364_v18 = vld [vmem:[%s614_s0 + $0x4] sm:$0x3]  ;;  %v365_v19 = vld [vmem:[%s614_s0 + $0x10] sm:$0x3]  ;;  %v87_v21 = vsub.f32 %v83_v10, %v85_v7  ;;  %v366_v22 = vld [vmem:[%s614_s0 + $0x6] sm:$0x3] }
   0x8   :  { %v367_v23 = vld [vmem:[%s614_s0 + $0x12] sm:$0x3]  ;;  %v161_v25 = vmul.f32 %v86_v14, %v86_v14  ;;  %v96_v26 = vsub.f32 %v91_v15, %v362_v13  ;;  %v104_v28 = vsub.f32 %v366_v22, %v364_v18  ;;  %vm120_vm1 = vcmp.eq.s32.totalorder %v397_v20, 1  ;;  %v372_v39 = vld [vmem:[%s614_s0 + $0x8] sm:$0x3] }
   0x9   :  { %v97_v27 = vsub.f32 %v92_v16, %v363_v17  ;;  %v162_v29 = vmul.f32 %v87_v21, %v87_v21  ;;  %v105_v30 = vsub.f32 %v367_v23, %v365_v19  ;;  %vm121_vm2 = vcmp.eq.s32.totalorder %v399_v24, 1  ;;  %v373_v44 = vld [vmem:[%s614_s0 + $0x14] sm:$0x3]  ;;  %v374_v48 = vld [vmem:[%s614_s0 + $0xa] sm:$0x3] }
   0xa   :  { %v167_v31 = vsel %vm166_vm0, %v161_v25, 0.0  ;;  %v163_v32 = vmul.f32 %v96_v26, %v96_v26  ;;  %v513_v34 = vsel %vm120_vm1, 1.0, %v421_v0  ;;  %v368_v37 = vmul.f32 -1.442695, %v104_v28  ;;  %v375_v49 = vld [vmem:[%s614_s0 + $0x16] sm:$0x3] }
   0xb   :  { %v164_v33 = vmul.f32 %v97_v27, %v97_v27  ;;  %v168_v35 = vrot.slane %v167_v31, 4  ;;  %v174_v36 = vsel %vm166_vm0, %v162_v29, 0.0  ;;  %v369_v38 = vmul.f32 -1.442695, %v105_v30  ;;  %v376_v2 = vld [vmem:[%s615_s1 + $0x6] sm:$0x3] }
   0xc   :  { %v175_v40 = vrot.slane %v174_v36, 4  ;;  %v190_v41 = vsel %vm166_vm0, %v163_v32, 0.0  ;;  %v522_v43 = vsel %vm121_vm2, 1.0, %v421_v0  ;;  %405 = vpow2.f32 %v368_v37  ;;  %v377_v13 = vld [vmem:[%s615_s1 + $0xe] sm:$0x3] }
   0xd   :  { %v197_v42 = vsel %vm166_vm0, %v164_v33, 0.0  ;;  %v169_v45 = vadd.f32 %v168_v35, %v167_v31  ;;  %v191_v46 = vrot.slane %v190_v41, 4  ;;  %407 = vpow2.f32 %v369_v38  ;;  %v165_v19 = vld [vmem:[%s613_s2] sm:$0x3]  ;;  %v382_v24 = vld [vmem:[%s613_s2 + $0x2] sm:$0x3] }
   0xe   :  { %v198_v47 = vrot.slane %v197_v42, 4  ;;  %v176_v50 = vadd.f32 %v175_v40, %v174_v36  ;;  %v256_v51 = vsel %vm166_vm0, %v513_v34, 0.0  ;;  %v263_v52 = vsel %vm166_vm0, %v522_v43, 0.0 }
   0xf   :  { %v170_v53 = vrot.slane %v169_v45, 2  ;;  %v192_v54 = vadd.f32 %v191_v46, %v190_v41  ;;  %v257_v56 = vrot.slane %v256_v51, 4  ;;  %v264_v58 = vrot.slane %v263_v52, 4 }
  0x10   :  { %v199_v55 = vadd.f32 %v198_v47, %v197_v42  ;;  %v177_v57 = vrot.slane %v176_v50, 2  ;;  %v137_v59 = vsub.f32 %v374_v48, %v372_v39  ;;  %v138_v60 = vsub.f32 %v375_v49, %v373_v44  ;;  %v388_v39 = vld [vmem:[%s613_s2 + $0x8] sm:$0x3] }
  0x11   :  { %v171_v61 = vadd.f32 %v170_v53, %v169_v45  ;;  %v193_v62 = vrot.slane %v192_v54, 2  ;;  %v258_v1 = vadd.f32 %v257_v56, %v256_v51  ;;  %v265_v4 = vadd.f32 %v264_v58, %v263_v52 }
  0x12   :  { %v200_v63 = vrot.slane %v199_v55, 2  ;;  %v178_v3 = vadd.f32 %v177_v57, %v176_v50  ;;  %v378_v5 = vmul.f32 -1.442695, %v137_v59  ;;  %v379_v6 = vmul.f32 -1.442695, %v138_v60 }
  0x13   :  { %v172_v7 = vrot.slane %v171_v61, 1  ;;  %v194_v8 = vadd.f32 %v193_v62, %v192_v54  ;;  %v259_v10 = vrot.slane %v258_v1, 2  ;;  %v266_v12 = vrot.slane %v265_v4, 2 }
  0x14   :  { %v201_v9 = vadd.f32 %v200_v63, %v199_v55  ;;  %v179_v11 = vrot.slane %v178_v3, 1  ;;  %409 = vpow2.f32 %v378_v5  ;;  %v400_v14 = vtrunc.f32 %v376_v2 }
  0x15   :  { %v173_v15 = vadd.f32 %v172_v7, %v171_v61  ;;  %v195_v16 = vrot.slane %v194_v8, 1  ;;  %v260_v18 = vadd.f32 %v259_v10, %v258_v1  ;;  %v267_v21 = vadd.f32 %v266_v12, %v265_v4 }
  0x16   :  { %v202_v17 = vrot.slane %v201_v9, 1  ;;  %v180_v20 = vadd.f32 %v179_v11, %v178_v3  ;;  %411 = vpow2.f32 %v379_v6  ;;  %v401_v22 = vcvt.f32.s32 %v400_v14  ;;  %v406_v23 = vpop.eup %405 }
  0x17   :  { %v196_v25 = vadd.f32 %v195_v16, %v194_v8  ;;  %v261_v27 = vrot.slane %v260_v18, 1  ;;  %v402_v28 = vtrunc.f32 %v377_v13  ;;  %v408_v29 = vpop.eup %407  ;;  %v112_v31 = vadd.f32 1.0, %v406_v23 }
  0x18   :  { %v203_v26 = vadd.f32 %v202_v17, %v201_v9  ;;  %v184_v30 = vsel %vm183_vm3, %v180_v20, %v173_v15  ;;  %v268_v32 = vrot.slane %v267_v21, 1  ;;  %vm153_vm4 = vcmp.eq.s32.totalorder %v401_v22, 1 }
  0x19   :  { %v186_v33 = vadd.f32 %v184_v30, %v165_v19  ;;  %v113_v36 = vadd.f32 1.0, %v408_v29  ;;  %v262_v37 = vadd.f32 %v261_v27, %v260_v18  ;;  %413 = vrcp.f32 %v112_v31 }
  0x1a   :  { %v206_v35 = vsel %vm183_vm3, %v203_v26, %v196_v25  ;;  %v269_v40 = vadd.f32 %v268_v32, %v267_v21  ;;  %v403_v41 = vcvt.f32.s32 %v402_v28  ;;  %v380_v42 = vsel %vm153_vm4, 1.0, %v421_v0 }
  0x1b   :  { %v208_v38 = vadd.f32 %v382_v24, %v206_v35  ;;  %187 = vst [vmem:[%s613_s2] sm:$0x3] %v186_v33  ;;  %415 = vrcp.f32 %v113_v36  ;;  %v322_v45 = vsel %vm166_vm0, %v380_v42, 0.0 }
  0x1c   :  { %v272_v44 = vsel %vm183_vm3, %v269_v40, %v262_v37  ;;  %vm154_vm5 = vcmp.eq.s32.totalorder %v403_v41, 1  ;;  %v323_v48 = vrot.slane %v322_v45, 4 }
  0x1d   :  { %383 = vst [vmem:[%s613_s2 + $0x2] sm:$0x3] %v208_v38  ;;  %v274_v46 = vadd.f32 %v388_v39, %v272_v44  ;;  %v381_v47 = vsel %vm154_vm5, 1.0, %v421_v0  ;;  %v386_v44 = vld [vmem:[%s613_s2 + $0x6] sm:$0x3] }
  0x1e   :  { %v410_v49 = vpop.eup %409  ;;  %v329_v50 = vsel %vm166_vm0, %v381_v47, 0.0  ;;  %v324_v52 = vadd.f32 %v323_v48, %v322_v45 }
  0x1f   :  { %389 = vst [vmem:[%s613_s2 + $0x8] sm:$0x3] %v274_v46  ;;  %v145_v51 = vadd.f32 1.0, %v410_v49  ;;  %v330_v53 = vrot.slane %v329_v50, 4 }
  0x20   :  { %v412_v54 = vpop.eup %411  ;;  %v325_v56 = vrot.slane %v324_v52, 2 }
  0x21   :  { %v146_v55 = vadd.f32 1.0, %v412_v54  ;;  %417 = vrcp.f32 %v145_v51  ;;  %v331_v57 = vadd.f32 %v330_v53, %v329_v50  ;;  %v384_v51 = vld [vmem:[%s613_s2 + $0x4] sm:$0x3] }
  0x22   :  { %v326_v58 = vadd.f32 %v325_v56, %v324_v52 }
  0x23   :  { %419 = vrcp.f32 %v146_v55  ;;  %v332_v59 = vrot.slane %v331_v57, 2  ;;  %v414_v0 = vpop.eup %413 }
  0x24   :  { %v126_v61 = vmul.f32 %v414_v0, %v513_v34  ;;  %v234_v62 = vsel %vm166_vm0, %v414_v0, 0.0  ;;  %v327_v63 = vrot.slane %v326_v58, 1 }
  0x25   :  { %v416_v60 = vpop.eup %415  ;;  %v333_v1 = vadd.f32 %v332_v59, %v331_v57  ;;  %v235_v3 = vrot.slane %v234_v62, 4 }
  0x26   :  { %v127_v2 = vmul.f32 %v416_v60, %v522_v43  ;;  %v241_v4 = vsel %vm166_vm0, %v416_v60, 0.0  ;;  %v212_v5 = vsel %vm166_vm0, %v126_v61, 0.0  ;;  %v328_v7 = vadd.f32 %v327_v63, %v326_v58  ;;  %v394_v43 = vld [vmem:[%s613_s2 + $0xe] sm:$0x3] }
  0x27   :  { %v242_v6 = vrot.slane %v241_v4, 4  ;;  %v334_v8 = vrot.slane %v333_v1, 1  ;;  %v213_v9 = vrot.slane %v212_v5, 4  ;;  %v236_v11 = vadd.f32 %v235_v3, %v234_v62 }
  0x28   :  { %v219_v10 = vsel %vm166_vm0, %v127_v2, 0.0 }
  0x29   :  { %v220_v12 = vrot.slane %v219_v10, 4  ;;  %v243_v34 = vadd.f32 %v242_v6, %v241_v4  ;;  %v335_v13 = vadd.f32 %v334_v8, %v333_v1  ;;  %v214_v14 = vadd.f32 %v213_v9, %v212_v5  ;;  %v390_v8 = vld [vmem:[%s613_s2 + $0xa] sm:$0x3] }
  0x2a   :  { %v237_v15 = vrot.slane %v236_v11, 2 }
  0x2b   :  { %v418_v16 = vpop.eup %417  ;;  %v221_v17 = vadd.f32 %v220_v12, %v219_v10  ;;  %v244_v18 = vrot.slane %v243_v34, 2  ;;  %v338_v19 = vsel %vm183_vm3, %v335_v13, %v328_v7  ;;  %v215_v20 = vrot.slane %v214_v14, 2  ;;  %v392_v10 = vld [vmem:[%s613_s2 + $0xc] sm:$0x3] }
  0x2c   :  { %v238_v21 = vadd.f32 %v237_v15, %v236_v11  ;;  %v159_v22 = vmul.f32 %v418_v16, %v380_v42  ;;  %v300_v23 = vsel %vm166_vm0, %v418_v16, 0.0  ;;  %v340_v28 = vadd.f32 %v394_v43, %v338_v19 }
  0x2d   :  { %v420_v24 = vpop.eup %419  ;;  %v222_v25 = vrot.slane %v221_v17, 2  ;;  %v245_v26 = vadd.f32 %v244_v18, %v243_v34  ;;  %v301_v27 = vrot.slane %v300_v23, 4  ;;  %v216_v29 = vadd.f32 %v215_v20, %v214_v14 }
  0x2e   :  { %v239_v30 = vrot.slane %v238_v21, 1  ;;  %v160_v31 = vmul.f32 %v420_v24, %v381_v47  ;;  %v278_v32 = vsel %vm166_vm0, %v159_v22, 0.0  ;;  %395 = vst [vmem:[%s613_s2 + $0xe] sm:$0x3] %v340_v28  ;;  %v307_v41 = vsel %vm166_vm0, %v420_v24, 0.0 }
  0x2f   :  { %v223_v33 = vadd.f32 %v222_v25, %v221_v17  ;;  %v246_v35 = vrot.slane %v245_v26, 1  ;;  %v279_v36 = vrot.slane %v278_v32, 4  ;;  %v302_v37 = vadd.f32 %v301_v27, %v300_v23 }
  0x30   :  { %v217_v38 = vrot.slane %v216_v29, 1  ;;  %v240_v39 = vadd.f32 %v239_v30, %v238_v21  ;;  %v285_v40 = vsel %vm166_vm0, %v160_v31, 0.0  ;;  %v308_v50 = vrot.slane %v307_v41, 4 }
  0x31   :  { %v224_v42 = vrot.slane %v223_v33, 1  ;;  %v247_v45 = vadd.f32 %v246_v35, %v245_v26  ;;  %v280_v46 = vadd.f32 %v279_v36, %v278_v32  ;;  %v286_v47 = vrot.slane %v285_v40, 4 }
  0x32   :  { %v218_v48 = vadd.f32 %v217_v38, %v216_v29  ;;  %v303_v49 = vrot.slane %v302_v37, 2  ;;  %v309_v58 = vadd.f32 %v308_v50, %v307_v41 }
  0x33   :  { %v225_v52 = vadd.f32 %v224_v42, %v223_v33  ;;  %v250_v53 = vsel %vm183_vm3, %v247_v45, %v240_v39  ;;  %v281_v54 = vrot.slane %v280_v46, 2  ;;  %v287_v55 = vadd.f32 %v286_v47, %v285_v40 }
  0x34   :  { %v252_v56 = vadd.f32 %v386_v44, %v250_v53  ;;  %v304_v57 = vadd.f32 %v303_v49, %v302_v37  ;;  %v310_v63 = vrot.slane %v309_v58, 2 }
  0x35   :  { %v228_v59 = vsel %vm183_vm3, %v225_v52, %v218_v48  ;;  %v282_v0 = vadd.f32 %v281_v54, %v280_v46  ;;  %v288_v60 = vrot.slane %v287_v55, 2 }
  0x36   :  { %v230_v61 = vadd.f32 %v384_v51, %v228_v59  ;;  %387 = vst [vmem:[%s613_s2 + $0x6] sm:$0x3] %v252_v56  ;;  %v305_v62 = vrot.slane %v304_v57, 1  ;;  %v311_v3 = vadd.f32 %v310_v63, %v309_v58 }
  0x37   :  { %v283_v1 = vrot.slane %v282_v0, 1  ;;  %v289_v2 = vadd.f32 %v288_v60, %v287_v55 }
  0x38   :  { %385 = vst [vmem:[%s613_s2 + $0x4] sm:$0x3] %v230_v61  ;;  %v306_v6 = vadd.f32 %v305_v62, %v304_v57  ;;  %v312_v7 = vrot.slane %v311_v3, 1 }
  0x39   :  { %v284_v4 = vadd.f32 %v283_v1, %v282_v0  ;;  %v290_v5 = vrot.slane %v289_v2, 1 }
  0x3a   :  { %v313_v11 = vadd.f32 %v312_v7, %v311_v3 }
  0x3b   :  { %v291_v9 = vadd.f32 %v290_v5, %v289_v2 }
  0x3c   :  { %v316_v13 = vsel %vm183_vm3, %v313_v11, %v306_v6 }
  0x3d   :  { %v294_v12 = vsel %vm183_vm3, %v291_v9, %v284_v4  ;;  %v318_v14 = vadd.f32 %v392_v10, %v316_v13 }
  0x3e   :  { %v296_v34 = vadd.f32 %v390_v8, %v294_v12 }
  0x3f   :  { %393 = vst [vmem:[%s613_s2 + $0xc] sm:$0x3] %v318_v14 }
  0x40   :  { %391 = vst [vmem:[%s613_s2 + $0xa] sm:$0x3] %v296_v34 }

</bundles_post_ra>
